<compile_context>
chip_gen: v5e
topology: v5e:2x2
jax: 0.10.0
libtpu: 0.0.40
codegen_flags: <defaults>
</compile_context>

<pallas_src>
import jax
import jax.numpy as jnp
from jax import lax
from jax.experimental import pallas as pl
from jax.experimental.pallas import tpu as pltpu


# ----------------------------------------------------------------------------
# Pallas kernel: one bf16 matmul + bias + ReLU per batch block
# ----------------------------------------------------------------------------
def folded_linear_relu_kernel(x_ref, w_ref, b_ref, o_ref):
    # x_ref: (block_b, H*W) f32   w_ref: (6, H*W) bf16   b_ref: (1, 6) f32
    x = x_ref[...].astype(jnp.bfloat16)                      # cast in-register
    acc = jnp.dot(x, w_ref[...].T,                           # MXU, f32 accumulate
                  preferred_element_type=jnp.float32)        # (block_b, 6)
    o_ref[...] = jnp.maximum(acc + b_ref[...], 0.0)


def model1_forward(x_nchw, folded, *, block_b=1):
    n, c, h, w = x_nchw.shape
    assert c == 1
    hw = h * w
    assert n % block_b == 0, "block_b must divide the batch"
    g = n // block_b

    # C_in == 1, so NCHW -> (grid, block_b, H*W) is a free row-major reshape
    # and matches torch.flatten ordering used when building the folded weight.
    x = x_nchw.reshape(g, block_b, hw)

    out = pl.pallas_call(
        folded_linear_relu_kernel,
        out_shape=jax.ShapeDtypeStruct((g, block_b, 6), jnp.float32),
        grid=(g,),
        in_specs=[
            pl.BlockSpec((None, block_b, hw), lambda i: (i, 0, 0)),  # activations
            # Resident (constant-index) folded weight / bias.
            # TODO(synk): at the real 645x410 size add pipeline_mode=pl.Buffered(1)
            # here to avoid double-buffering the resident weight in VMEM.
            pl.BlockSpec((6, hw), lambda i: (0, 0)),                 # folded W (bf16)
            pl.BlockSpec((1, 6), lambda i: (0, 0)),                  # folded bias
        ],
        out_specs=pl.BlockSpec((None, block_b, 6), lambda i: (i, 0, 0)),
        compiler_params=pltpu.CompilerParams(
            dimension_semantics=("parallel",)),                      # megacore-friendly
    )(x, folded["w"], folded["b"])
    return out.reshape(n, 6)


# ----------------------------------------------------------------------------
# Parameters in PyTorch layout + exact init-time affine fold
# ----------------------------------------------------------------------------
def init_params(key, h, w):
    """Raw parameters in PyTorch layout (conv OIHW, linear (out, in))."""
    hf, wf = h - 6, w - 6
    feat = 50 * hf * wf
    ks = jax.random.split(key, 8)

    def nrm(k, shape, scale=0.1):
        return scale * jax.random.normal(k, shape, jnp.float32)

    return dict(
        w1=nrm(ks[0], (10, 1, 3, 3)),  b1=nrm(ks[3], (10,)),
        w2=nrm(ks[1], (20, 10, 3, 3)), b2=nrm(ks[4], (20,)),
        w3=nrm(ks[2], (50, 20, 3, 3)), b3=nrm(ks[5], (50,)),
        wl=nrm(ks[6], (6, feat), scale=0.01), bl=nrm(ks[7], (6,)),
    )


def _affine_forward(x_nchw, params):
    """conv1 -> conv2 -> conv3 -> flatten(NCHW) -> linear, NO ReLU.  Exact
    PyTorch semantics; f32 with HIGHEST precision (used for fold + reference)."""
    y = x_nchw
    for wk, bk in (("w1", "b1"), ("w2", "b2"), ("w3", "b3")):
        y = lax.conv_general_dilated(
            y, params[wk], window_strides=(1, 1), padding="VALID",
            dimension_numbers=("NCHW", "OIHW", "NCHW"),
            precision=lax.Precision.HIGHEST)
        y = y + params[bk][None, :, None, None]
    y = y.reshape(y.shape[0], -1)                 # torch.flatten(start_dim=1) on NCHW
    return jnp.dot(y, params["wl"].T, precision=lax.Precision.HIGHEST) + params["bl"]


def model1_reference(x_nchw, raw):
    """Pure-JAX reference with exact module semantics (for verification)."""
    return jnp.maximum(_affine_forward(x_nchw, raw), 0.0)


def fold_params(raw, h, w):
    """Fold the purely-affine conv1∘conv2∘conv3∘flatten∘linear stack into a
    single (6, H*W) matrix + (6,) bias.  Exact (no nonlinearity between those
    layers in the module); computed once at init in f32/HIGHEST."""
    hw = h * w
    raw_nobias = dict(raw, **{k: jnp.zeros_like(v)
                              for k, v in raw.items() if k.startswith("b")})
    # Columns of the folded matrix = affine map applied to the H*W basis images
    # (C_in == 1, row-major flatten, matching the wrapper's reshape).
    basis = jnp.eye(hw, dtype=jnp.float32).reshape(hw, 1, h, w)
    wmat = _affine_forward(basis, raw_nobias).T                            # (6, hw)
    bias = _affine_forward(jnp.zeros((1, 1, h, w), jnp.float32), raw)[0]   # (6,)
    return dict(w=wmat.astype(jnp.bfloat16),   # bf16 MXU operand, lane-dense (6, hw)
                w_f32=wmat,                    # kept only for the f32 fold check
                b=bias.reshape(1, 6))


# ----------------------------------------------------------------------------
if __name__ == "__main__":
    key = jax.random.PRNGKey(0)
    kx, kp = jax.random.split(key)

    N, C, H, W = 2, 1, 14, 14            # conv stack -> (N, 50, 8, 8); F = 3200
    x = jax.random.normal(kx, (N, C, H, W), jnp.float32)
    raw = init_params(kp, H, W)
    folded = fold_params(raw, H, W)

    # block_b=1 -> grid=(2,) "parallel": keeps both TCs busy on v7x; on v5e/v6e
    # a larger block_b (whole batch per step) is the better setting.
    out = jax.block_until_ready(model1_forward(x, folded, block_b=1))

    # --- verification -------------------------------------------------------
    ref_full = model1_reference(x, raw)                       # exact module semantics
    x_flat = x.reshape(N, H * W)
    ref_fold = jnp.maximum(                                   # folded affine, all f32
        jnp.dot(x_flat, folded["w_f32"].T, precision=lax.Precision.HIGHEST)
        + folded["b"], 0.0)
    ref_bf16 = jnp.maximum(                                   # bf16-matched reference
        jnp.dot(x_flat.astype(jnp.bfloat16), folded["w"].T,
                preferred_element_type=jnp.float32) + folded["b"], 0.0)

    assert out.shape == (N, 6) and out.dtype == jnp.float32
    assert bool(jnp.all(out >= 0.0))                          # ReLU applied

    # (a) tight f32 check that the init-time fold is exact (catches any wrong
    #     permutation / flatten-order bug).
    err_fold = float(jnp.max(jnp.abs(ref_fold - ref_full)))
    assert err_fold < 2e-4, f"affine fold mismatch vs conv reference: {err_fold}"

    # (b) kernel vs bf16-matched XLA reference: same math, should agree ~exactly.
    err_kern = float(jnp.max(jnp.abs(out - ref_bf16)))
    assert err_kern < 1e-4, f"kernel mismatch vs bf16-matched reference: {err_kern}"

    # (c) end-to-end vs the full f32 reference; tolerance is the bf16 operand
    #     rounding budget of a 196-term dot (kernel deliberately uses bf16 MXU).
    err_e2e = float(jnp.max(jnp.abs(out - ref_full)))
    assert err_e2e < 3e-2, f"end-to-end mismatch (bf16 budget): {err_e2e}"

    print("KERNEL_OK")
</pallas_src>

<mosaic_0001>
module attributes {stable_mosaic.version = 11 : i64} {
  func.func @folded_linear_relu_kernel(%arg0: i32, %arg1: memref<1x1x196xf32, #tpu.memory_space<vmem>>, %arg2: memref<6x196xbf16, #tpu.memory_space<vmem>>, %arg3: memref<1x6xf32, #tpu.memory_space<vmem>>, %arg4: memref<1x1x6xf32, #tpu.memory_space<vmem>>) attributes {dimension_semantics = [#tpu.dimension_semantics<parallel>], iteration_bounds = array<i64: 2>, scalar_prefetch = 0 : i64, scratch_operands = 0 : i64, tpu.core_type = #tpu.core_type<tc>, window_params = [{transform_indices = @transform_0, window_bounds = array<i64: 1, 1, 196>}, {pipeline_mode = #tpu.pipeline_mode<synchronous>, transform_indices = @transform_1, window_bounds = array<i64: 6, 196>}, {pipeline_mode = #tpu.pipeline_mode<synchronous>, transform_indices = @transform_2, window_bounds = array<i64: 1, 6>}, {transform_indices = @transform_3, window_bounds = array<i64: 1, 1, 6>}]} {
    %c0 = arith.constant 0 : index
    %c0_0 = arith.constant 0 : index
    %c0_1 = arith.constant 0 : index
    %0 = vector.load %arg1[%c0, %c0_0, %c0_1] : memref<1x1x196xf32, #tpu.memory_space<vmem>>, vector<1x1x196xf32>
    %1 = vector.shape_cast %0 : vector<1x1x196xf32> to vector<1x196xf32>
    %2 = arith.truncf %1 : vector<1x196xf32> to vector<1x196xbf16>
    %c0_2 = arith.constant 0 : index
    %c0_3 = arith.constant 0 : index
    %3 = vector.load %arg2[%c0_2, %c0_3] : memref<6x196xbf16, #tpu.memory_space<vmem>>, vector<6x196xbf16>
    %4 = tpu.transpose %3, [1, 0] : vector<6x196xbf16> -> vector<196x6xbf16>
    %cst = arith.constant dense<0.000000e+00> : vector<1x6xf32>
    %5 = tpu.matmul %2, %4, %cst {dimension_numbers = #tpu.dot_dimension_numbers<[1], [0], [0], [1], [0, 0, 1, 1], [], []>} : vector<1x196xbf16>, vector<196x6xbf16>, vector<1x6xf32> -> vector<1x6xf32>
    %c0_4 = arith.constant 0 : index
    %c0_5 = arith.constant 0 : index
    %6 = vector.load %arg3[%c0_4, %c0_5] : memref<1x6xf32, #tpu.memory_space<vmem>>, vector<1x6xf32>
    %7 = arith.addf %5, %6 : vector<1x6xf32>
    %cst_6 = arith.constant 0.000000e+00 : f32
    %8 = vector.broadcast %cst_6 : f32 to vector<1x6xf32>
    %9 = arith.maximumf %7, %8 : vector<1x6xf32>
    %c0_7 = arith.constant 0 : index
    %c0_8 = arith.constant 0 : index
    %c0_9 = arith.constant 0 : index
    %10 = vector.load %arg4[%c0_7, %c0_8, %c0_9] : memref<1x1x6xf32, #tpu.memory_space<vmem>>, vector<1x1x6xf32>
    %11 = vector.shape_cast %10 : vector<1x1x6xf32> to vector<1x6xf32>
    %12 = vector.shape_cast %9 : vector<1x6xf32> to vector<1x1x6xf32>
    tpu.vector_store %arg4[%c0_7, %c0_8, %c0_9], %12 {strides = array<i32>} : memref<1x1x6xf32, #tpu.memory_space<vmem>>, vector<1x1x6xf32>,
    return
  }
  func.func @transform_0(%arg0: i32) -> (i32, i32, i32) {
    %c0_i32 = arith.constant 0 : i32
    %c0_i32_0 = arith.constant 0 : i32
    %c0_i32_1 = arith.constant 0 : i32
    return %arg0, %c0_i32, %c0_i32_0 : i32, i32, i32
  }
  func.func @transform_1(%arg0: i32) -> (i32, i32) {
    %c0_i32 = arith.constant 0 : i32
    %c0_i32_0 = arith.constant 0 : i32
    %c0_i32_1 = arith.constant 0 : i32
    return %c0_i32, %c0_i32_0 : i32, i32
  }
  func.func @transform_2(%arg0: i32) -> (i32, i32) {
    %c0_i32 = arith.constant 0 : i32
    %c0_i32_0 = arith.constant 0 : i32
    %c0_i32_1 = arith.constant 0 : i32
    return %c0_i32, %c0_i32_0 : i32, i32
  }
  func.func @transform_3(%arg0: i32) -> (i32, i32, i32) {
    %c0_i32 = arith.constant 0 : i32
    %c0_i32_0 = arith.constant 0 : i32
    %c0_i32_1 = arith.constant 0 : i32
    return %arg0, %c0_i32, %c0_i32_0 : i32, i32, i32
  }
}

</mosaic_0001>

<bundles_post_ra>
// kernel: tpu_custom_call.1
= control target key start
LH: loop header
LB: loop body
LE: loop exit
PB: predicated region body
PF: predicated region fallthrough
CT: control target
= control target key end

     0   :  { %8 = vsyncpa [#allocation3], 0  ;;  %s708_s0 = inlined_call_operand.hbm [shape: f32[2,1,196], index: 0, kind: input, shape index: {}]   ;;  %s709_s1 = inlined_call_operand.hbm [shape: bf16[6,196], index: 1, kind: input, shape index: {}]   ;;  %s710_s2 = inlined_call_operand.vmem [shape: f32[1,6], index: 2, kind: input, shape index: {}]   ;;  %s711_s3 = inlined_call_operand.hbm [shape: f32[2,1,6], index: 3, kind: output, shape index: {}]  }
   0x1   :  { %10 = vsyncpa [#allocation3 + $0x1], 0 }
   0x2   :  { %11 = vsyncpa [#allocation6], 0 }
   0x3   :  { %12 = vsyncpa [#allocation4], 0 }
   0x4   :  { %14 = vsyncpa [#allocation4 + $0x1], 0  ;;  %s566_s12 = smov 0   ;;  %s568_s13 = smov 0  }
   0x5   :  { %s570_s14 = smov 0   ;;  %s572_s15 = smov 0  }
   0x6 LB: > { %s587_s16 = sadd.s32 4294967295, %s543_s15   ;;  %s344_s17 = sadd.s32 4294967294, %s543_s15   ;;  %s543_s15 = sphi %s572_s15, %s721_s15   ;;  %s539_s14 = sphi %s570_s14, %s720_s14   ;;  %s535_s13 = sphi %s568_s13, %s719_s13   ;;  %s531_s12 = sphi %s566_s12, %s718_s12  }
   0x7   : > { %p40_p0 = scmp.ne.s32.totalorder %s535_s13, %s531_s12  ;;  %p41_p1 = scmp.eq.s32.totalorder %s587_s16, 0 }
   0x8   : > { %p106_p2 = scmp.eq.s32.totalorder %s587_s16, 1  ;;  %p112_p3 = scmp.eq.s32.totalorder %s344_s17, 1 }
   0x9   : > { %p596_p4 = por %p41_p1, %p40_p0  ;;  %p345_p5 = scmp.ge.s32.totalorder %s543_s15, 1 }
   0xa   : > { %p601_p6 = por %p112_p3, %p40_p0  ;;  %p119_p7 = scmp.lt.s32.totalorder %s543_s15, 3 }
   0xb   : > { %s131_s22 = sshll.u32 %s709_s1, 4  ;;  %s545_s24 = smov [#allocation5]   ;;  %s132_s22 = int_to_ptr.hbm [resolvable:$true] %s131_s22 }
   0xc   : > { %p609_p8 = pnand %p345_p5, %p119_p7  ;;  %s133_s25 = sshll.u32 %s545_s24, 4  ;;  %s134_s25 = int_to_ptr.vmem [resolvable:$true] %s133_s25 }
   0xd   : > { %s619_s26 = sadd.s32 1, %s543_s15   ;;  %s27_s27 = sadd.s32 1, %s539_s14 }
   0xe   : > { %p364_p10 = pneg %p609_p8  ;;  %s24_s28 = ssub.s32 %s543_s15, %s619_s26 }
   0xf   : > { %p25_p12 = scmp.eq.s32.totalorder %s24_s28, 0  ;;  %p34_p13 = scmp.ne.s32.totalorder %s539_s14, %s535_s13 }
  0x10   : > { %p365_p11 = pnand %p364_p10, %p41_p1  ;;  %p35_p0 = scmp.eq.s32.totalorder %s543_s15, 0 }
  0x11   : > { %s628_s29 = scalar_select %p25_p12, %s539_s14, %s27_s27  }
  0x12   : > { %367 = dma.hbm_to_vmem [thread:$0]  (!%p365_p11), %s132_s22, 128, %s134_s25, [#allocation6]  }
  0x13   : > { %p632_p3 = por %p106_p2, %p34_p13  ;;  %p377_p5 = scmp.lt.s32.totalorder %s543_s15, 2 }
  0x14   : > { %s147_s4 = sand.u32 1, %s539_s14   ;;  %s349_s5 = sshll.u32 %s543_s15, 1 }
  0x15   : > { %p36_p7 = por %p35_p0, %p34_p13  ;;  %s348_s6 = sshll.u32 %s147_s4, 1 }
  0x16   : > { %s155_s9 = scalar_lea.hbm %s708_s0, %s349_s5  ;;  %s151_s11 = scalar_lea.vmem [#allocation2], %s348_s6 }
  0x17   : > { %s157_s10 = sshll.u32 %s155_s9, 4  ;;  %s159_s17 = sshll.u32 %s151_s11, 4  ;;  %s158_s10 = int_to_ptr.hbm [resolvable:$true] %s157_s10  ;;  %s160_s17 = int_to_ptr.vmem [resolvable:$true] %s159_s17 }
  0x18   : > { %p642_p10 = pnand %p377_p5, %p36_p7  ;;  %s148_s21 = scalar_lea.sflag [#allocation3], %s147_s4 }
  0x19   : > { %s443_s22 = sshra.s32 %s158_s10, 4  ;;  %s450_s28 = scalar_lea.hbm %s708_s0, 4  ;;  %s444_s22 = int_to_ptr.hbm [resolvable:$true] %s443_s22 }
  0x1a   : > { %s445_s24 = scalar_lea.hbm %s444_s22, 2  ;;  %p447_p11 = pneg %p642_p10 }
  0x1b   : > { %p446_p2 = scmp.ne.s32.totalorder %s444_s22, %s445_s24  ;;  %p451_p0 = scmp.lt.s32.totalorder %s444_s22, %s708_s0 }
  0x1c   : > { %p452_p5 = scmp.lt.s32.totalorder %s450_s28, %s445_s24 }
  0x1d   : > { %p448_p12 = pnand %p447_p11, %p446_p2 }
  0x1e   : > { %p453_p7 = por %p452_p5, %p451_p0 }
  0x1f   : > { %p449_p13 = pneg %p448_p12 }
  0x21   : > { %p454_p9 = pnand %p453_p7, %p449_p13 }
  0x23   : > { %457 = shalt.err (!%p454_p9)
}
  0x24   : > { %371 = dma.hbm_to_vmem [thread:$0]  (!%p642_p10), %s158_s10, 32, %s160_s17, %s148_s21  }
  0x25   : > { %168 = sbr.rel (%p609_p8) target bundleno = 193 (0xc1), region = 32  ;;  %s659_s4 = sand.u32 (!%p609_p8), 1, %s535_s13  }
  0x26   : > { %s351_s7 = sshll.u32 (!%p609_p8), %s659_s4, 1  ;;  %s171_s8 = scalar_lea.sflag (!%p609_p8), [#allocation3], %s659_s4 }
  0x27   : > { %s174_s9 = scalar_lea.vmem (!%p609_p8), [#allocation2], %s351_s7 }
  0x2a   : > { %518 = dma.done.wait (%p596_p4), %s171_s8, 32  }
  0x2b   : > { %520 = vsyncadd (%p596_p4), %s171_s8, 4294967264 }
  0x2c   : > { %522 = dma.done.wait (%p41_p1), [#allocation6], 128  }
  0x2d   : > { %524 = vsyncadd (%p41_p1), [#allocation6], 4294967168  ;;  %v211_v0 = vld [vmem:[#allocation5] sm:$0x77]  ;;  %v203_v3 = vld [vmem:[%s174_s9] sm:$0x3]  ;;  %s264_s17 = scalar_lea.hbm %s711_s3, %s587_s16 }
  0x2e   : > { %v214_v1 = vunpack.c.l.b16 %v211_v0  ;;  %v215_v2 = vunpack.c.h.b16 %v211_v0  ;;  %vm219_vm0 = vcmask 556032   ;;  %v205_v6 = vperm.slane %v203_v3, 0  ;;  %v212_v11 = vld [vmem:[%s710_s2] sm:$0x1]  ;;  %s201_s20 = scalar_lea.vmem [#allocation7], %s659_s4  ;;  %s268_s22 = sshll.u32 %s264_s17, 4  ;;  %s269_s22 = int_to_ptr.hbm [resolvable:$true] %s268_s22 }
  0x2f   : > { %v206_v8 = vperm.slane %v203_v3, 1  ;;  %s266_s21 = sshll.u32 %s201_s20, 4  ;;  %vm253_vm1 = vcmask 40960   ;;  %s256_s24 = scalar_lea.sflag [#allocation4], %s659_s4  ;;  %s267_s21 = int_to_ptr.vmem [resolvable:$true] %s266_s21 }
  0x30   : > { %v216_v4 = vpack.c.b16 %v214_v1, %v214_v1  ;;  %v217_v5 = vpack.c.b16 %v215_v2, %v215_v2  ;;  %v209_v9 = vpack.c.bf16 %v205_v6, %v205_v6  ;;  %s487_s25 = sshra.s32 %s269_s22, 4  ;;  %s493_s5 = scalar_lea.hbm %s711_s3, 2  ;;  %s488_s25 = int_to_ptr.hbm [resolvable:$true] %s487_s25 }
  0x31   : > { %v210_v10 = vpack.c.bf16 %v206_v8, %v206_v8  ;;  %s489_s27 = scalar_lea.hbm %s488_s25, 1  ;;  %p494_p9 = scmp.lt.s32.totalorder %s488_s25, %s711_s3 }
  0x32   : > { %233 = vmatpush.bf16.xpose.msra.mxu0 %v216_v4  ;;  %v224_v7 = vsel %vm219_vm0, %v217_v5, 0  ;;  %p490_p1 = scmp.ne.s32.totalorder %s488_s25, %s489_s27  ;;  %p495_p10 = scmp.lt.s32.totalorder %s493_s5, %s489_s27 }
  0x33   : > { %246 = vmatpush.bf16.xpose.msra.mxu1 %v224_v7 }
  0x34   : > { %p491_p4 = pnand %p490_p1, %p632_p3  ;;  %p496_p2 = por %p495_p10, %p494_p9 }
  0x36   : > { %p492_p8 = pneg %p491_p4 }
  0x38   : > { %p497_p11 = pnand %p496_p2, %p492_p8 }
  0x39   : > { %234 = vmatmul.bf16.vlgmr.msra.gmra.mxu0 %v209_v9 }
  0x3a   : > { %353 = vmatmul.msk.bf16.vlgmr.msra.gmra.mxu1 %vm219_vm0, %v210_v10 }
  0xb6   : > { %v235_v12 = vpop.f32.mrf.mxu0 }
  0xb7   : > { %v236_v13 = vadd.f32 %v235_v12, %v212_v11  ;;  %v248_v14 = vpop.f32.mrf.mxu1 }
  0xb9   : > { %v249_v15 = vadd.f32 %v248_v14, %v236_v13 }
  0xbb   : > { %v252_v16 = vmax.f32 %v249_v15, 0.0 }
  0xbd   : > { %254 = vst.msk [vmem:[%s201_s20] sm:$0x1] %vm253_vm1, %v252_v16 }
  0xbe   : > { %v237_v17 = vpop.f32.mrf.mxu0 }
  0xbf   : > { %500 = shalt.err (!%p497_p11)
}
  0xc0   : > { %362 = dma.vmem_to_hbm [thread:$0]  (%p632_p3), %s267_s21, 16, %s269_s22, %s256_s24   ;;  %v250_v18 = vpop.f32.mrf.mxu1 }
  0xc1 PF: > { %s280_s4 = sand.u32 1, %s531_s12   ;;  %p717_p12 = scmp.ge.s32.totalorder %s543_s15, 2 }
  0xc2   : > { %s281_s8 = scalar_lea.sflag [#allocation4], %s280_s4 }
  0xc3   : > { %p373_p13 = pnand %p717_p12, %p601_p6 }
  0xc5   : > { %p374_p0 = pneg %p373_p13 }
  0xc7   : > { %526 = dma.done.wait (%p374_p0), %s281_s8, 16  }
  0xc8   : > { %528 = vsyncadd (%p374_p0), %s281_s8, 4294967280  ;;  %p17_p5 = scmp.ge.s32.totalorder %s619_s26, 4   ;;  %s718_s12 = smov %s535_s13 }
  0xc9   : > { %s719_s13 = smov %s539_s14  ;;  %s720_s14 = smov %s628_s29 }
  0xca   : > { %s721_s15 = smov %s619_s26  ;;  %19 = sbr.rel (!%p17_p5) target bundleno = 6 (0x6), region = 81 }
  0xcf   :  { %286 = vsyncpa [#allocation3], 1 }
  0xd0   :  { %288 = vsyncpa [#allocation3 + $0x1], 1 }
  0xd1   :  { %289 = vsyncpa [#allocation6], 1 }
  0xd2   :  { %290 = vsyncpa [#allocation4], 1 }
  0xd3   :  { %292 = vsyncpa [#allocation4 + $0x1], 1 }

</bundles_post_ra>
